<compile_context>
chip_gen: v5e
topology: v5e:2x2
jax: 0.10.0
libtpu: 0.0.40
codegen_flags: <defaults>
</compile_context>

<pallas_src>
import jax
import jax.numpy as jnp
from jax import lax
from jax.experimental import pallas as pl
from jax.experimental.pallas import tpu as pltpu


def _round_up(x, m):
    return ((x + m - 1) // m) * m


def _shape_nn_kernel(x_ref, w_ref, b_ref, o_ref):
    # x_ref: (TB, C)        -- natural-layout batch tile
    # w_ref: (out_dim, C)   -- resident, PyTorch nn.Linear layout
    # b_ref: (1, out_dim)   -- resident
    # o_ref: (TB, out_dim)  -- natural-layout output tile
    y = lax.dot_general(
        x_ref[...], w_ref[...],
        dimension_numbers=(((1,), (1,)), ((), ())),   # contract on C, on-chip
        preferred_element_type=jnp.float32)           # (TB, out_dim)
    y = y + b_ref[...]                                # broadcast bias over rows
    o_ref[...] = jax.nn.sigmoid(y) * 1.1 + 0.4        # EUP sigmoid + VPU affine


def _select_batch_tile(B):
    """Batch tile: big enough to amortize per-step overhead, small enough for
    v5e's 16 MiB scoped-VMEM default; >=2 grid steps once B is non-trivial so
    v7x's two TensorCores both get work."""
    TB_CAP = 16384                      # ~6 MiB double-buffered in+out (f32)
    if B <= 1024:
        return B                        # single full-extent block
    return min(TB_CAP, _round_up(pl.cdiv(B, 2), 128))


def shape_nn_forward(lt, weight, bias, n_primitives):
    """ShapeNN forward.

    lt:     (B, C) float32 input features.
    weight: (n_primitives*2, C) float32 -- PyTorch nn.Linear layout
            (out_features, in_features).
    bias:   (n_primitives*2,) float32.
    Returns (B, n_primitives, 2) float32.
    """
    B, C = lt.shape
    out_dim = n_primitives * 2
    assert weight.shape == (out_dim, C)
    assert bias.shape == (out_dim,)

    b2d = bias.reshape(1, out_dim)      # (1, out_dim) for row broadcast

    TB = _select_batch_tile(B)
    grid = (pl.cdiv(B, TB),)            # ragged tail handled by Pallas masking

    out = pl.pallas_call(
        _shape_nn_kernel,
        out_shape=jax.ShapeDtypeStruct((B, out_dim), jnp.float32),
        grid=grid,
        in_specs=[
            pl.BlockSpec((TB, C), lambda i: (i, 0)),        # batch tile
            pl.BlockSpec((out_dim, C), lambda i: (0, 0)),   # resident weight
            pl.BlockSpec((1, out_dim), lambda i: (0, 0)),   # resident bias
        ],
        out_specs=pl.BlockSpec((TB, out_dim), lambda i: (i, 0)),
        compiler_params=pltpu.CompilerParams(
            dimension_semantics=("parallel",)),              # v7x: 2 TCs
    )(lt, weight, b2d)

    # Pure metadata reshape to match .view(-1, n_primitives, 2).
    return out.reshape(-1, n_primitives, 2)


def _reference(lt, weight, bias, n_primitives):
    ref = jax.nn.sigmoid(lt @ weight.T + bias) * 1.1 + 0.4
    return ref.reshape(-1, n_primitives, 2)


if __name__ == "__main__":
    n_primitives = 8
    input_channels = 32
    batch = 2

    key = jax.random.PRNGKey(0)
    k_x, k_w, k_b, k_x2 = jax.random.split(key, 4)

    # Deterministic init (mimics PyTorch Linear's uniform bound 1/sqrt(in)).
    bound = 1.0 / (input_channels ** 0.5)
    lt = jax.random.normal(k_x, (batch, input_channels), dtype=jnp.float32)
    weight = jax.random.uniform(
        k_w, (n_primitives * 2, input_channels),
        minval=-bound, maxval=bound, dtype=jnp.float32)
    bias = jax.random.uniform(
        k_b, (n_primitives * 2,),
        minval=-bound, maxval=bound, dtype=jnp.float32)

    # Small-batch path (single full-extent block; dispatch-bound, see header).
    shapes = shape_nn_forward(lt, weight, bias, n_primitives)
    jax.block_until_ready(shapes)
    assert shapes.shape == (batch, n_primitives, 2)
    assert jnp.allclose(shapes, _reference(lt, weight, bias, n_primitives),
                        atol=1e-5, rtol=1e-5)

    # Larger ragged batch: exercises multi-step grid, the parallel axis, and
    # the in-kernel handling of the partial trailing block (no wrapper pad).
    big_batch = 1537
    lt_big = jax.random.normal(k_x2, (big_batch, input_channels),
                               dtype=jnp.float32)
    shapes_big = shape_nn_forward(lt_big, weight, bias, n_primitives)
    jax.block_until_ready(shapes_big)
    assert shapes_big.shape == (big_batch, n_primitives, 2)
    assert jnp.allclose(shapes_big,
                        _reference(lt_big, weight, bias, n_primitives),
                        atol=1e-5, rtol=1e-5)

    print("KERNEL_OK")
</pallas_src>

<mosaic_0001>
module attributes {stable_mosaic.version = 11 : i64} {
  func.func @_shape_nn_kernel(%arg0: i32, %arg1: memref<2x32xf32, #tpu.memory_space<vmem>>, %arg2: memref<16x32xf32, #tpu.memory_space<vmem>>, %arg3: memref<1x16xf32, #tpu.memory_space<vmem>>, %arg4: memref<2x16xf32, #tpu.memory_space<vmem>>) attributes {dimension_semantics = [#tpu.dimension_semantics<parallel>], iteration_bounds = array<i64: 1>, scalar_prefetch = 0 : i64, scratch_operands = 0 : i64, tpu.core_type = #tpu.core_type<tc>, window_params = [{transform_indices = @transform_0, window_bounds = array<i64: 2, 32>}, {pipeline_mode = #tpu.pipeline_mode<synchronous>, transform_indices = @transform_1, window_bounds = array<i64: 16, 32>}, {pipeline_mode = #tpu.pipeline_mode<synchronous>, transform_indices = @transform_2, window_bounds = array<i64: 1, 16>}, {transform_indices = @transform_3, window_bounds = array<i64: 2, 16>}]} {
    %c0 = arith.constant 0 : index
    %c0_0 = arith.constant 0 : index
    %0 = vector.load %arg1[%c0, %c0_0] : memref<2x32xf32, #tpu.memory_space<vmem>>, vector<2x32xf32>
    %c0_1 = arith.constant 0 : index
    %c0_2 = arith.constant 0 : index
    %1 = vector.load %arg2[%c0_1, %c0_2] : memref<16x32xf32, #tpu.memory_space<vmem>>, vector<16x32xf32>
    %cst = arith.constant dense<0.000000e+00> : vector<2x16xf32>
    %2 = tpu.matmul %0, %1, %cst {dimension_numbers = #tpu.dot_dimension_numbers<[1], [1], [0], [0], [0, 0, 1, 0], [], []>} : vector<2x32xf32>, vector<16x32xf32>, vector<2x16xf32> -> vector<2x16xf32>
    %c0_3 = arith.constant 0 : index
    %c0_4 = arith.constant 0 : index
    %3 = vector.load %arg3[%c0_3, %c0_4] : memref<1x16xf32, #tpu.memory_space<vmem>>, vector<1x16xf32>
    %4 = vector.broadcast %3 : vector<1x16xf32> to vector<2x16xf32>
    %5 = arith.addf %2, %4 : vector<2x16xf32>
    %6 = arith.negf %5 : vector<2x16xf32>
    %7 = math.exp %6 : vector<2x16xf32>
    %cst_5 = arith.constant 1.000000e+00 : f32
    %8 = vector.broadcast %cst_5 : f32 to vector<2x16xf32>
    %9 = arith.addf %8, %7 : vector<2x16xf32>
    %10 = arith.divf %8, %9 : vector<2x16xf32>
    %cst_6 = arith.constant 1.100000e+00 : f32
    %11 = vector.broadcast %cst_6 : f32 to vector<2x16xf32>
    %12 = arith.mulf %10, %11 : vector<2x16xf32>
    %cst_7 = arith.constant 4.000000e-01 : f32
    %13 = vector.broadcast %cst_7 : f32 to vector<2x16xf32>
    %14 = arith.addf %12, %13 : vector<2x16xf32>
    %c0_8 = arith.constant 0 : index
    %c0_9 = arith.constant 0 : index
    %15 = vector.load %arg4[%c0_8, %c0_9] : memref<2x16xf32, #tpu.memory_space<vmem>>, vector<2x16xf32>
    tpu.vector_store %arg4[%c0_8, %c0_9], %14 {strides = array<i32>} : memref<2x16xf32, #tpu.memory_space<vmem>>, vector<2x16xf32>,
    return
  }
  func.func @transform_0(%arg0: i32) -> (i32, i32) {
    %c0_i32 = arith.constant 0 : i32
    %c0_i32_0 = arith.constant 0 : i32
    return %arg0, %c0_i32 : i32, i32
  }
  func.func @transform_1(%arg0: i32) -> (i32, i32) {
    %c0_i32 = arith.constant 0 : i32
    %c0_i32_0 = arith.constant 0 : i32
    %c0_i32_1 = arith.constant 0 : i32
    return %c0_i32, %c0_i32_0 : i32, i32
  }
  func.func @transform_2(%arg0: i32) -> (i32, i32) {
    %c0_i32 = arith.constant 0 : i32
    %c0_i32_0 = arith.constant 0 : i32
    %c0_i32_1 = arith.constant 0 : i32
    return %c0_i32, %c0_i32_0 : i32, i32
  }
  func.func @transform_3(%arg0: i32) -> (i32, i32) {
    %c0_i32 = arith.constant 0 : i32
    %c0_i32_0 = arith.constant 0 : i32
    return %arg0, %c0_i32 : i32, i32
  }
}

</mosaic_0001>

<bundles_post_ra>
// kernel: tpu_custom_call.1
= control target key start
LH: loop header
LB: loop body
LE: loop exit
PB: predicated region body
PF: predicated region fallthrough
CT: control target
= control target key end

     0   :  { %8 = vsyncpa [#allocation3], 0  ;;  %s252_s0 = inlined_call_operand.hbm [shape: f32[2,32], index: 0, kind: input, shape index: {}]   ;;  %s253_s1 = inlined_call_operand.hbm [shape: f32[16,32], index: 1, kind: input, shape index: {}]   ;;  %s254_s2 = inlined_call_operand.vmem [shape: f32[1,16], index: 2, kind: input, shape index: {}]   ;;  %s255_s3 = inlined_call_operand.hbm [shape: f32[2,16], index: 3, kind: output, shape index: {}]  }
   0x1   :  { %9 = vsyncpa [#allocation6], 0 }
   0x2   :  { %10 = vsyncpa [#allocation4], 0  ;;  %s16_s14 = sshll.u32 %s252_s0, 4  ;;  %s215_s15 = smov [#allocation2]   ;;  %s17_s14 = int_to_ptr.hbm [resolvable:$true] %s16_s14 }
   0x3   :  { %s18_s16 = sshll.u32 %s215_s15, 4  ;;  %s26_s19 = sshll.u32 %s253_s1, 4  ;;  %s19_s16 = int_to_ptr.vmem [resolvable:$true] %s18_s16  ;;  %s27_s19 = int_to_ptr.hbm [resolvable:$true] %s26_s19 }
   0x4   :  { %21 = dma.hbm_to_vmem [thread:$0]  %s17_s14, 32, %s19_s16, [#allocation3]  }
   0x5   :  { %s216_s20 = smov [#allocation5]   ;;  %s217_s22 = smov 128  }
   0x6   :  { %s28_s21 = sshll.u32 %s216_s20, 4  ;;  %s218_s23 = smov 8   ;;  %s29_s21 = int_to_ptr.vmem [resolvable:$true] %s28_s21 }
   0x7   :  { %34 = dma.hbm_to_vmem [thread:$0]  %s27_s19, 256, %s29_s21, [#allocation6], %s217_s22, %s217_s22, %s218_s23  }
   0x8   :  { %209 = dma.done.wait [#allocation3], 32  }
   0x9   :  { %210 = vsyncadd [#allocation3], 4294967264 }
   0xa   :  { %211 = dma.done.wait [#allocation6], 256  }
   0xb   :  { %212 = vsyncadd [#allocation6], 4294967040  ;;  %vm52_vm0 = vcmask 261120   ;;  %v47_v0 = vld [vmem:[#allocation5 + $0x8] sm:$0xff]  ;;  %v46_v1 = vld [vmem:[#allocation5] sm:$0xff]  ;;  %s112_s27 = sshll.u32 %s255_s3, 4  ;;  %s113_s27 = int_to_ptr.hbm [resolvable:$true] %s112_s27 }
   0xc   :  { %123 = vmatpush.xpose.msk.msra.mxu0 %vm52_vm0, %v47_v0  ;;  %v45_v2 = vld [vmem:[#allocation2] sm:$0x3]  ;;  %vm103_vm5 = vcmask 123904  }
   0xd   :  { %v132_v3 = vld [vmem:[%s254_s2] ss:$0 sm:$0xff]  ;;  %s219_s2 = smov [#allocation7]  }
   0xe   :  { %s110_s24 = sshll.u32 %s219_s2, 4  ;;  %s111_s24 = int_to_ptr.vmem [resolvable:$true] %s110_s24 }
  0x10   :  { %124 = vmatpush.xpose.msk.msra.mxu0 %vm52_vm0, %v46_v1 }
  0x13   :  { %125 = vmatmul.msk.f32.vlgmr.msra.gmra.mxu0 %vm52_vm0, %v45_v2 }
  0x90   :  { %v79_v4 = vpop.f32.mrf.mxu0 }
  0x91   :  { %v80_v5 = vadd.f32 %v132_v3, %v79_v4 }
  0x93   :  { %v126_v6 = vmul.f32 -1.442695, %v80_v5 }
  0x95   :  { %133 = vpow2.f32 %v126_v6 }
  0x9b   :  { %v134_v7 = vpop.eup %133 }
  0x9c   :  { %v85_v8 = vadd.f32 1.0, %v134_v7 }
  0x9e   :  { %135 = vrcp.f32 %v85_v8  ;;  %v97_v12 = vand.u32 2147483648, %v85_v8  ;;  %v95_v14 = vand.u32 2147483647, %v85_v8  ;;  %vm91_vm2 = vweird.f32 %v85_v8 }
  0xa0   :  { %v98_v16 = vor.u32 1.1754944e-38, %v97_v12  ;;  %vm96_vm4 = vcmp.eq.f32.partialorder %v95_v14, 8.507059e+37 }
  0xa4   :  { %v136_v9 = vpop.eup %135 }
  0xa5   :  { %v87_v10 = vmul.f32 %v136_v9, %v85_v8  ;;  %vm92_vm1 = vweird.f32 %v136_v9 }
  0xa6   :  { %vm93_vm3 = vmor %vm91_vm2, %vm92_vm1 }
  0xa7   :  { %v88_v11 = vsub.f32 1.0, %v87_v10 }
  0xa9   :  { %v89_v13 = vmul.f32 %v136_v9, %v88_v11 }
  0xab   :  { %v90_v15 = vadd.f32 %v136_v9, %v89_v13 }
  0xad   :  { %v94_v17 = vsel %vm93_vm3, %v136_v9, %v90_v15 }
  0xae   :  { %v99_v18 = vsel %vm96_vm4, %v98_v16, %v94_v17 }
  0xaf   :  { %v101_v19 = vmul.f32 1.1, %v99_v18 }
  0xb1   :  { %v102_v20 = vadd.f32 0.4, %v101_v19 }
  0xb3   :  { %104 = vst.msk [vmem:[#allocation7] sm:$0x3] %vm103_vm5, %v102_v20 }
  0xb4   :  { %115 = dma.vmem_to_hbm [thread:$0]  %s111_s24, 32, %s113_s27, [#allocation4]  }
  0xb5   :  { %213 = dma.done.wait [#allocation4], 32  }
  0xb6   :  { %214 = vsyncadd [#allocation4], 4294967264 }
  0xb7   :  { %120 = vsyncpa [#allocation3], 1 }
  0xb8   :  { %121 = vsyncpa [#allocation6], 1 }
  0xb9   :  { %122 = vsyncpa [#allocation4], 1 }

</bundles_post_ra>
